<compile_context>
chip_gen: v5e
topology: v5e:2x2
jax: 0.10.0
libtpu: 0.0.40
codegen_flags: <defaults>
</compile_context>

<pallas_src>
import jax
import jax.numpy as jnp
from jax.experimental import pallas as pl
from jax.experimental.pallas import tpu as pltpu

EPS = 1e-5  # nn.LayerNorm default


def _patch_expand_kernel(x_ref, w_ref, a_ref, g_ref, b_ref, o_ref):
    # x_ref: (T*W, C)        pixels of T image rows
    # w_ref: (C, s*C)        pre-centered expand weight (chunk-mean folded in)
    # a_ref: (s*C, s*C)      block-diagonal 1/c2 averaging matrix (s*s blocks)
    # g_ref/b_ref: (1, s*C)  LayerNorm affine, tiled s*s times
    # o_ref: (T, s, W, s*c2) pixel-shuffled output block
    T, s, W, group = o_ref.shape
    x = x_ref[...]
    # Fused full-width, pre-centered expand: cent = y - chunk_mean(y) in ONE matmul.
    cent = jnp.dot(x, w_ref[...], preferred_element_type=jnp.float32)          # (T*W, s*C)
    # Per-c2-chunk biased variance, lane-replicated, on the otherwise-idle MXU.
    # (For very large C on v5e this could move to an XLU segmented reduce instead.)
    var = jnp.dot(cent * cent, a_ref[...], preferred_element_type=jnp.float32)  # (T*W, s*C)
    normed = cent * jax.lax.rsqrt(var + EPS)                                     # stats in f32
    gamma = g_ref[...].astype(o_ref.dtype)
    beta = b_ref[...].astype(o_ref.dtype)
    # Affine + cast in the output dtype (bf16 on v6e/v7x when the model is bf16).
    out = normed.astype(o_ref.dtype) * gamma + beta                              # (T*W, s*C)
    for g in range(s):  # s == dim_scale (2): tiny static unroll; one wide store per p1 group
        o_ref[:, g:g + 1, :, :] = out[:, g * group:(g + 1) * group].reshape(T, 1, W, group)


def _vmem_budget_and_limit():
    """Generation-aware VMEM sizing (v5e/v6e: 128 MiB physical, v7x: 64 MiB)."""
    mib = 1024 * 1024
    try:
        cap = int(getattr(pltpu.get_tpu_info(), "vmem_capacity_bytes", 64 * mib))
    except Exception:  # not on TPU / older runtime -> conservative fallback
        cap = 64 * mib
    budget = min(int(cap * 0.55), 64 * mib)   # budget used for tile sizing
    limit = min(int(cap * 0.75), 96 * mib)    # explicit scoped-VMEM limit
    return budget, limit


def _choose_rows_per_step(n_rows, W, C, s, x_item, out_item, vmem_budget_bytes,
                          max_pixels=4096):
    """Largest divisor of n_rows (= B*H) whose tile fits the VMEM budget while
    keeping >= 8 grid steps when possible (>= 4 per v7x TensorCore, the grid
    axis is 'parallel'), and respecting the (8,128) sublane rule on the
    (rows*W, C) input block."""
    group = s * (C // s)           # == C
    wide = s * group               # == s*C
    # Resident constant-index-map operands, budgeted conservatively as double-buffered.
    fixed = 2 * (C * wide * x_item + wide * wide * 4 + 2 * wide * 4)
    # Per-pixel cost: double-buffered input/output blocks + live f32 intermediates.
    per_pixel = 2 * C * x_item + 2 * wide * out_item + 3 * wide * 4
    # NOTE: for very large C (f32 C >~ 1.5K) `fixed` alone approaches v7x's VMEM;
    # a production path should then stream the weight from HBM (memory_space=pl.ANY)
    # or add a second grid axis over the output-channel dim.
    avail = max(vmem_budget_bytes - fixed, per_pixel * W)   # never below one image row
    px_cap = min(max_pixels, avail // per_pixel)

    # Legal tile heights: P = d*W must be a multiple of 8 (sublane) or the full array.
    divisors = [d for d in range(1, n_rows + 1)
                if n_rows % d == 0 and ((d * W) % 8 == 0 or d == n_rows)]
    min_steps = min(n_rows, 8)
    for want_steps in (min_steps, min(n_rows, 2), 1):
        for d in reversed(divisors):
            if d * W <= px_cap and n_rows // d >= want_steps:
                return d
    return divisors[0]


def patch_expand_2d(x, w_t, gamma, beta, dim_scale=2, rows_per_step=None):
    """x: (B, H, W, C); w_t: (C, dim_scale*C) (transposed Linear weight, no bias);
    gamma/beta: (C // dim_scale,). Returns (B, dim_scale*H, dim_scale*W, C // dim_scale)."""
    B, H, W, C = x.shape
    s = dim_scale
    assert C % s == 0
    c2 = C // s
    group = s * c2                 # channels per p1 group (== C)
    wide = s * group               # full expanded width (== s*C)
    n_rows = B * H

    vmem_budget, vmem_limit = _vmem_budget_and_limit()
    if rows_per_step is None:
        rows_per_step = _choose_rows_per_step(
            n_rows, W, C, s, x.dtype.itemsize, x.dtype.itemsize, vmem_budget)
    assert n_rows % rows_per_step == 0, "B*H must be divisible by rows_per_step"
    n_steps = n_rows // rows_per_step
    P = rows_per_step * W          # matmul rows per grid step

    x2d = x.reshape(n_rows * W, C)

    # Pre-center the expand weight: the LayerNorm mean is linear in x, so folding
    # the per-(p1,p2)-chunk column mean into the weight removes one MXU matmul
    # and one (P, s*C) f32 temporary from the kernel.
    w3 = w_t.reshape(C, s * s, c2)
    w_cent = (w3 - w3.mean(axis=-1, keepdims=True)).reshape(C, wide).astype(x.dtype)

    # Block-diagonal averaging matrix over all s*s chunks of c2 channels:
    # (v @ a_mat)[:, j] = mean of the c2-chunk containing column j.
    idx = jnp.arange(wide) // c2
    a_mat = (idx[:, None] == idx[None, :]).astype(jnp.float32) / c2

    # Affine params tiled to the full s*C width (one wide multiply/add in-kernel).
    g_t = jnp.tile(gamma.astype(jnp.float32), s * s).reshape(1, wide)
    b_t = jnp.tile(beta.astype(jnp.float32), s * s).reshape(1, wide)

    out4 = pl.pallas_call(
        _patch_expand_kernel,
        out_shape=jax.ShapeDtypeStruct((n_rows, s, W, group), x.dtype),
        grid=(n_steps,),
        in_specs=[
            # If profiling shows exposed input DMA at large tiles, add
            # pipeline_mode=pl.Buffered(3) here (skip when VMEM is tight on v7x).
            pl.BlockSpec((P, C), lambda i: (i, 0)),
            # constant index maps -> fetched once, resident in VMEM across steps
            pl.BlockSpec((C, wide), lambda i: (0, 0)),
            pl.BlockSpec((wide, wide), lambda i: (0, 0)),
            pl.BlockSpec((1, wide), lambda i: (0, 0)),
            pl.BlockSpec((1, wide), lambda i: (0, 0)),
        ],
        out_specs=pl.BlockSpec((rows_per_step, s, W, group),
                               lambda i: (i, 0, 0, 0)),
        compiler_params=pltpu.CompilerParams(
            dimension_semantics=("parallel",),
            vmem_limit_bytes=vmem_limit),
    )(x2d, w_cent, a_mat, g_t, b_t)

    # (B*H, s, W, s*c2) flat element order is already (b, h, p1, w, p2, c):
    # this reshape is contiguous (no transpose, no extra HBM pass).
    return out4.reshape(B, s * H, s * W, c2)


def _reference(x, w_t, gamma, beta, dim_scale=2):
    B, H, W, C = x.shape
    c2 = C // dim_scale
    y = x @ w_t  # (B, H, W, dim_scale*C)
    y = y.reshape(B, H, W, dim_scale, dim_scale, c2)
    y = y.transpose(0, 1, 3, 2, 4, 5).reshape(B, H * dim_scale, W * dim_scale, c2)
    mean = y.mean(-1, keepdims=True)
    var = ((y - mean) ** 2).mean(-1, keepdims=True)
    return (y - mean) / jnp.sqrt(var + EPS) * gamma + beta


if __name__ == "__main__":
    # Module constructed with dim=16 -> self.dim = C = 32, dim_scale = 2.
    dim = 16
    dim_scale = 2
    C = dim * 2               # channels of the input to forward()
    B, H, W = 2, 8, 8

    key = jax.random.PRNGKey(0)
    kx, kw, kg, kb = jax.random.split(key, 4)

    x = jax.random.normal(kx, (B, H, W, C), dtype=jnp.float32)
    # nn.Linear(self.dim, dim_scale*self.dim, bias=False): weight (2C, C); use W^T.
    w_t = jax.random.normal(kw, (C, dim_scale * C), dtype=jnp.float32) * 0.05
    # LayerNorm(self.dim // dim_scale) affine params (deterministic, nontrivial).
    gamma = 1.0 + 0.1 * jax.random.normal(kg, (C // dim_scale,), dtype=jnp.float32)
    beta = 0.1 * jax.random.normal(kb, (C // dim_scale,), dtype=jnp.float32)

    out = patch_expand_2d(x, w_t, gamma, beta, dim_scale=dim_scale)
    out = jax.block_until_ready(out)

    ref = _reference(x, w_t, gamma, beta, dim_scale=dim_scale)
    assert out.shape == (B, H * dim_scale, W * dim_scale, C // dim_scale)
    assert jnp.allclose(out, ref, rtol=1e-5, atol=1e-5), "mismatch vs reference"

    print("KERNEL_OK")
</pallas_src>

<mosaic_0001>
module attributes {stable_mosaic.version = 11 : i64} {
  func.func @_patch_expand_kernel(%arg0: i32, %arg1: memref<16x32xf32, #tpu.memory_space<vmem>>, %arg2: memref<32x64xf32, #tpu.memory_space<vmem>>, %arg3: memref<64x64xf32, #tpu.memory_space<vmem>>, %arg4: memref<1x64xf32, #tpu.memory_space<vmem>>, %arg5: memref<1x64xf32, #tpu.memory_space<vmem>>, %arg6: memref<2x2x8x32xf32, #tpu.memory_space<vmem>>) attributes {dimension_semantics = [#tpu.dimension_semantics<parallel>], iteration_bounds = array<i64: 8>, scalar_prefetch = 0 : i64, scratch_operands = 0 : i64, tpu.core_type = #tpu.core_type<tc>, window_params = [{transform_indices = @transform_0, window_bounds = array<i64: 16, 32>}, {pipeline_mode = #tpu.pipeline_mode<synchronous>, transform_indices = @transform_1, window_bounds = array<i64: 32, 64>}, {pipeline_mode = #tpu.pipeline_mode<synchronous>, transform_indices = @transform_2, window_bounds = array<i64: 64, 64>}, {pipeline_mode = #tpu.pipeline_mode<synchronous>, transform_indices = @transform_3, window_bounds = array<i64: 1, 64>}, {pipeline_mode = #tpu.pipeline_mode<synchronous>, transform_indices = @transform_4, window_bounds = array<i64: 1, 64>}, {transform_indices = @transform_5, window_bounds = array<i64: 2, 2, 8, 32>}]} {
    %c0 = arith.constant 0 : index
    %c0_0 = arith.constant 0 : index
    %0 = vector.load %arg1[%c0, %c0_0] : memref<16x32xf32, #tpu.memory_space<vmem>>, vector<16x32xf32>
    %c0_1 = arith.constant 0 : index
    %c0_2 = arith.constant 0 : index
    %1 = vector.load %arg2[%c0_1, %c0_2] : memref<32x64xf32, #tpu.memory_space<vmem>>, vector<32x64xf32>
    %cst = arith.constant dense<0.000000e+00> : vector<16x64xf32>
    %2 = tpu.matmul %0, %1, %cst {dimension_numbers = #tpu.dot_dimension_numbers<[1], [0], [0], [1], [0, 0, 1, 1], [], []>} : vector<16x32xf32>, vector<32x64xf32>, vector<16x64xf32> -> vector<16x64xf32>
    %3 = arith.mulf %2, %2 : vector<16x64xf32>
    %c0_3 = arith.constant 0 : index
    %c0_4 = arith.constant 0 : index
    %4 = vector.load %arg3[%c0_3, %c0_4] : memref<64x64xf32, #tpu.memory_space<vmem>>, vector<64x64xf32>
    %cst_5 = arith.constant dense<0.000000e+00> : vector<16x64xf32>
    %5 = tpu.matmul %3, %4, %cst_5 {dimension_numbers = #tpu.dot_dimension_numbers<[1], [0], [0], [1], [0, 0, 1, 1], [], []>} : vector<16x64xf32>, vector<64x64xf32>, vector<16x64xf32> -> vector<16x64xf32>
    %cst_6 = arith.constant 9.99999974E-6 : f32
    %6 = vector.broadcast %cst_6 : f32 to vector<16x64xf32>
    %7 = arith.addf %5, %6 : vector<16x64xf32>
    %8 = math.rsqrt %7 : vector<16x64xf32>
    %9 = arith.mulf %2, %8 : vector<16x64xf32>
    %c0_7 = arith.constant 0 : index
    %c0_8 = arith.constant 0 : index
    %10 = vector.load %arg4[%c0_7, %c0_8] : memref<1x64xf32, #tpu.memory_space<vmem>>, vector<1x64xf32>
    %c0_9 = arith.constant 0 : index
    %c0_10 = arith.constant 0 : index
    %11 = vector.load %arg5[%c0_9, %c0_10] : memref<1x64xf32, #tpu.memory_space<vmem>>, vector<1x64xf32>
    %12 = vector.broadcast %10 : vector<1x64xf32> to vector<16x64xf32>
    %13 = arith.mulf %9, %12 : vector<16x64xf32>
    %14 = vector.broadcast %11 : vector<1x64xf32> to vector<16x64xf32>
    %15 = arith.addf %13, %14 : vector<16x64xf32>
    %16 = vector.extract_strided_slice %15 {offsets = [0, 0], sizes = [16, 32], strides = [1, 1]} : vector<16x64xf32> to vector<16x32xf32>
    %17 = vector.shape_cast %16 : vector<16x32xf32> to vector<2x1x8x32xf32>
    %c0_11 = arith.constant 0 : index
    %c0_12 = arith.constant 0 : index
    %c0_13 = arith.constant 0 : index
    %c0_14 = arith.constant 0 : index
    %18 = vector.load %arg6[%c0_11, %c0_12, %c0_13, %c0_14] : memref<2x2x8x32xf32, #tpu.memory_space<vmem>>, vector<2x1x8x32xf32>
    tpu.vector_store %arg6[%c0_11, %c0_12, %c0_13, %c0_14], %17 {strides = array<i32>} : memref<2x2x8x32xf32, #tpu.memory_space<vmem>>, vector<2x1x8x32xf32>,
    %19 = vector.extract_strided_slice %15 {offsets = [0, 32], sizes = [16, 32], strides = [1, 1]} : vector<16x64xf32> to vector<16x32xf32>
    %20 = vector.shape_cast %19 : vector<16x32xf32> to vector<2x1x8x32xf32>
    %c0_15 = arith.constant 0 : index
    %c1 = arith.constant 1 : index
    %c0_16 = arith.constant 0 : index
    %c0_17 = arith.constant 0 : index
    %21 = vector.load %arg6[%c0_15, %c1, %c0_16, %c0_17] : memref<2x2x8x32xf32, #tpu.memory_space<vmem>>, vector<2x1x8x32xf32>
    tpu.vector_store %arg6[%c0_15, %c1, %c0_16, %c0_17], %20 {strides = array<i32>} : memref<2x2x8x32xf32, #tpu.memory_space<vmem>>, vector<2x1x8x32xf32>,
    return
  }
  func.func @transform_0(%arg0: i32) -> (i32, i32) {
    %c0_i32 = arith.constant 0 : i32
    %c0_i32_0 = arith.constant 0 : i32
    return %arg0, %c0_i32 : i32, i32
  }
  func.func @transform_1(%arg0: i32) -> (i32, i32) {
    %c0_i32 = arith.constant 0 : i32
    %c0_i32_0 = arith.constant 0 : i32
    %c0_i32_1 = arith.constant 0 : i32
    return %c0_i32, %c0_i32_0 : i32, i32
  }
  func.func @transform_2(%arg0: i32) -> (i32, i32) {
    %c0_i32 = arith.constant 0 : i32
    %c0_i32_0 = arith.constant 0 : i32
    %c0_i32_1 = arith.constant 0 : i32
    return %c0_i32, %c0_i32_0 : i32, i32
  }
  func.func @transform_3(%arg0: i32) -> (i32, i32) {
    %c0_i32 = arith.constant 0 : i32
    %c0_i32_0 = arith.constant 0 : i32
    %c0_i32_1 = arith.constant 0 : i32
    return %c0_i32, %c0_i32_0 : i32, i32
  }
  func.func @transform_4(%arg0: i32) -> (i32, i32) {
    %c0_i32 = arith.constant 0 : i32
    %c0_i32_0 = arith.constant 0 : i32
    %c0_i32_1 = arith.constant 0 : i32
    return %c0_i32, %c0_i32_0 : i32, i32
  }
  func.func @transform_5(%arg0: i32) -> (i32, i32, i32, i32) {
    %c0_i32 = arith.constant 0 : i32
    %c0_i32_0 = arith.constant 0 : i32
    %c0_i32_1 = arith.constant 0 : i32
    %c0_i32_2 = arith.constant 0 : i32
    return %arg0, %c0_i32, %c0_i32_0, %c0_i32_1 : i32, i32, i32, i32
  }
}

</mosaic_0001>

<bundles_post_ra>
// kernel: tpu_custom_call.1
= control target key start
LH: loop header
LB: loop body
LE: loop exit
PB: predicated region body
PF: predicated region fallthrough
CT: control target
= control target key end

     0   :  { %10 = vsyncpa [#allocation3], 0  ;;  %s742_s0 = inlined_call_operand.vmem [shape: f32[128,32], index: 0, kind: input, shape index: {}]   ;;  %s743_s1 = inlined_call_operand.vmem [shape: f32[32,64], index: 1, kind: input, shape index: {}]   ;;  %s744_s2 = inlined_call_operand.vmem [shape: f32[64,64], index: 2, kind: input, shape index: {}]   ;;  %s745_s3 = inlined_call_operand.vmem [shape: f32[1,64], index: 3, kind: input, shape index: {}]   ;;  %s746_s4 = inlined_call_operand.vmem [shape: f32[1,64], index: 4, kind: input, shape index: {}]   ;;  %s747_s5 = inlined_call_operand.hbm [shape: f32[16,2,8,32], index: 5, kind: output, shape index: {}]  }
   0x1   :  { %12 = vsyncpa [#allocation3 + $0x1], 0  ;;  %s606_s18 = smov 0   ;;  %s608_s19 = smov 0  }
   0x2   :  { %s610_s20 = smov 0   ;;  %s612_s21 = smov 0  }
   0x3 LB: > { %s627_s22 = sadd.s32 4294967295, %s571_s21   ;;  %s428_s23 = sadd.s32 4294967294, %s571_s21   ;;  %s571_s21 = sphi %s612_s21, %s753_s21   ;;  %s567_s20 = sphi %s610_s20, %s752_s20   ;;  %s563_s19 = sphi %s608_s19, %s751_s19   ;;  %s559_s18 = sphi %s606_s18, %s750_s18  }
   0x4   : > { %s631_s24 = sadd.s32 1, %s571_s21   ;;  %s135_s25 = sadd.s32 1, %s567_s20 }
   0x5   : > { %s132_s26 = ssub.s32 %s571_s21, %s631_s24  ;;  %p145_p0 = scmp.ne.s32.totalorder %s567_s20, %s563_s19 }
   0x6   : > { %p133_p1 = scmp.eq.s32.totalorder %s132_s26, 0  ;;  %p146_p2 = scmp.eq.s32.totalorder %s627_s22, 7 }
   0x7   : > { %p151_p3 = scmp.ne.s32.totalorder %s563_s19, %s559_s18  ;;  %p152_p4 = scmp.eq.s32.totalorder %s428_s23, 7 }
   0x8   : > { %s642_s27 = scalar_select %p133_p1, %s567_s20, %s135_s25  }
   0x9   : > { %p644_p5 = por %p146_p2, %p145_p0  ;;  %p648_p6 = por %p152_p4, %p151_p3 }
   0xa   : > { %p431_p7 = scmp.ge.s32.totalorder %s571_s21, 1  ;;  %p191_p8 = scmp.lt.s32.totalorder %s571_s21, 9 }
   0xc   : > { %p192_p9 = pnand %p431_p7, %p191_p8 }
   0xd   : > { %s433_s9 = sshll.u32 (!%p192_p9), %s627_s22, 1  ;;  %s216_s23 = sand.u32 (!%p192_p9), 1, %s563_s19  }
   0xe   : > { %195 = sbr.rel (%p192_p9) target bundleno = 438 (0x1b6), region = 40  ;;  %p220_p10 = scmp.lt.s32.totalorder (!%p192_p9), %s433_s9, 15 }
   0xf   : > { %s573_s8 = smov (!%p192_p9), 96   ;;  %s350_s16 = scalar_lea.sflag (!%p192_p9), [#allocation3], %s216_s23 }
  0x10   : > { %s529_s30 = scalar_lea.hbm (!%p192_p9), %s747_s5, 256 }
  0x13   : > { %v231_v0 = vld [vmem:[%s743_s1 + $0x18] sm:$0xff]  ;;  %v230_v1 = vld [vmem:[%s743_s1 + $0x10] sm:$0xff]  ;;  %v229_v4 = vld [vmem:[%s743_s1 + $0x8] sm:$0xff]  ;;  %s755_s9 = smov (!%p220_p10, %s433_s9), 15  ;;  %vm232_vm0 = vcmask 261120   ;;  %vm272_vm1 = vcmask 523264  }
  0x14   : > { %251 = vmatpush.msra.mxu0 %v231_v0  ;;  %449 = vmatpush.msra.mxu3 %v231_v0  ;;  %v271_v2 = vld [vmem:[%s744_s2 + $0x38] sm:$0xff]  ;;  %v270_v3 = vld [vmem:[%s744_s2 + $0x30] sm:$0xff]  ;;  %v269_v5 = vld [vmem:[%s744_s2 + $0x28] sm:$0xff]  ;;  %s434_s26 = sshll.u32 %s755_s9, 3  ;;  %s448_s9 = sshll.u32 %s627_s22, 5 }
  0x15   : > { %287 = vmatpush.msra.mxu1 %v271_v2  ;;  %453 = vmatpush.msra.mxu2 %v271_v2  ;;  %v228_v6 = vld [vmem:[%s743_s1] sm:$0xff]  ;;  %s223_s7 = scalar_lea.vmem %s742_s0, %s434_s26  ;;  %v267_v10 = vld [vmem:[%s744_s2 + $0x18] sm:$0xff]  ;;  %v266_v11 = vld [vmem:[%s744_s2 + $0x10] sm:$0xff]  ;;  %s362_s13 = scalar_lea.hbm %s747_s5, %s448_s9 }
  0x16   : > { %252 = vmatpush.msra.mxu0 %v230_v1  ;;  %450 = vmatpush.msra.mxu3 %v230_v1  ;;  %v268_v7 = vld [vmem:[%s744_s2 + $0x20] sm:$0xff]  ;;  %v227_v9 = vld [vmem:[%s223_s7 + $0x8] sm:$0xff]  ;;  %s365_s15 = sshll.u32 %s362_s13, 4  ;;  %s366_s15 = int_to_ptr.hbm [resolvable:$true] %s365_s15 }
  0x17   : > { %288 = vmatpush.msra.mxu1 %v270_v3  ;;  %454 = vmatpush.msra.mxu2 %v270_v3  ;;  %v226_v8 = vld [vmem:[%s223_s7] sm:$0xff]  ;;  %v265_v12 = vld [vmem:[%s744_s2 + $0x8] sm:$0xff]  ;;  %s432_s7 = sshll.u32 %s216_s23, 5  ;;  %s523_s17 = sshra.s32 %s366_s15, 4  ;;  %s524_s17 = int_to_ptr.hbm [resolvable:$true] %s523_s17 }
  0x18   : > { %253 = vmatpush.msra.mxu0 %v229_v4  ;;  %451 = vmatpush.msra.mxu3 %v229_v4  ;;  %v264_v13 = vld [vmem:[%s744_s2] sm:$0xff]  ;;  %s218_s10 = scalar_lea.vmem [#allocation2], %s432_s7  ;;  %s525_s25 = scalar_lea.hbm %s524_s17, 32 }
  0x19   : > { %289 = vmatpush.msra.mxu1 %v269_v5  ;;  %455 = vmatpush.msra.mxu2 %v269_v5  ;;  %v503_v28 = vld [vmem:[%s745_s3] ss:$0 sm:$0xff]  ;;  %s363_s14 = sshll.u32 %s218_s10, 4  ;;  %p526_p11 = scmp.ne.s32.totalorder %s524_s17, %s525_s25  ;;  %s364_s14 = int_to_ptr.vmem [resolvable:$true] %s363_s14 }
  0x1a   : > { %254 = vmatpush.msra.mxu0 %v228_v6  ;;  %452 = vmatpush.msra.mxu3 %v228_v6  ;;  %v504_v32 = vld [vmem:[%s746_s4] ss:$0 sm:$0xff]  ;;  %p530_p0 = scmp.lt.s32.totalorder %s524_s17, %s747_s5  ;;  %p531_p1 = scmp.lt.s32.totalorder %s529_s30, %s525_s25 }
  0x1b   : > { %435 = vmatmul.msk.f32.vlgmr.msra.gmra.mxu0 %vm232_vm0, %v226_v8  ;;  %436 = vmatmul.msk.f32.vlgmr.msra.gmra.mxu3 %vm232_vm0, %v227_v9  ;;  %p527_p12 = pnand %p526_p11, %p644_p5 }
  0x1c   : > { %290 = vmatpush.msra.mxu1 %v268_v7  ;;  %456 = vmatpush.msra.mxu2 %v268_v7  ;;  %p532_p2 = por %p531_p1, %p530_p0 }
  0x1d   : > { %p528_p13 = pneg %p527_p12 }
  0x1e   : > { %291 = vmatpush.msra.mxu1 %v267_v10  ;;  %457 = vmatpush.msra.mxu2 %v267_v10 }
  0x1f   : > { %p533_p3 = pnand %p532_p2, %p528_p13 }
  0x20   : > { %292 = vmatpush.msra.mxu1 %v266_v11  ;;  %458 = vmatpush.msra.mxu2 %v266_v11 }
  0x22   : > { %293 = vmatpush.msra.mxu1 %v265_v12  ;;  %459 = vmatpush.msra.mxu2 %v265_v12 }
  0x24   : > { %294 = vmatpush.msra.mxu1 %v264_v13  ;;  %460 = vmatpush.msra.mxu2 %v264_v13 }
  0x98   : > { %v256_v14 = vpop.f32.mrf.mxu0 }
  0x99   : > { %v262_v15 = vmul.f32 %v256_v14, %v256_v14 }
  0x9b   : > { %437 = vmatmul.msk.f32.vlgmr.msra.gmra.mxu1 %vm272_vm1, %v262_v15 }
  0x9e   : > { %v259_v16 = vpop.f32.mrf.mxu3 }
  0x9f   : > { %v263_v17 = vmul.f32 %v259_v16, %v259_v16 }
  0xa1   : > { %438 = vmatmul.msk.f32.vlgmr.msra.gmra.mxu2 %vm272_vm1, %v263_v17 }
 0x118   : > { %v296_v18 = vpop.f32.mrf.mxu1 }
 0x119   : > { %v297_v19 = vadd.f32 1e-05, %v296_v18 }
 0x11b   : > { %505 = vrsqrt.f32 %v297_v19  ;;  %vm308_vm3 = vweird.f32 %v297_v19 }
 0x121   : > { %v506_v20 = vpop.eup %505 }
 0x122   : > { %v303_v21 = vmul.f32 %v506_v20, %v297_v19  ;;  %vm309_vm2 = vweird.f32 %v506_v20 }
 0x123   : > { %vm310_vm4 = vmor %vm308_vm3, %vm309_vm2 }
 0x124   : > { %v304_v22 = vmul.f32 %v506_v20, %v303_v21  ;;  %v299_v23 = vpop.f32.mrf.mxu2 }
 0x125   : > { %v300_v24 = vadd.f32 1e-05, %v299_v23 }
 0x126   : > { %v305_v25 = vmul.f32 0.5, %v304_v22 }
 0x127   : > { %507 = vrsqrt.f32 %v300_v24  ;;  %vm318_vm6 = vweird.f32 %v300_v24 }
 0x128   : > { %v306_v26 = vsub.f32 1.5, %v305_v25 }
 0x12a   : > { %v307_v27 = vmul.f32 %v506_v20, %v306_v26 }
 0x12c   : > { %v311_v29 = vsel %vm310_vm4, %v506_v20, %v307_v27 }
 0x12d   : > { %v508_v30 = vpop.eup %507  ;;  %v322_v31 = vmul.f32 %v311_v29, %v256_v14 }
 0x12e   : > { %v313_v33 = vmul.f32 %v508_v30, %v300_v24  ;;  %vm319_vm5 = vweird.f32 %v508_v30 }
 0x12f   : > { %v329_v34 = vmul.f32 %v503_v28, %v322_v31  ;;  %vm320_vm7 = vmor %vm318_vm6, %vm319_vm5 }
 0x130   : > { %v314_v35 = vmul.f32 %v508_v30, %v313_v33 }
 0x131   : > { %v334_v36 = vadd.f32 %v504_v32, %v329_v34 }
 0x132   : > { %v315_v37 = vmul.f32 0.5, %v314_v35 }
 0x133   : > { %340 = vrot.lane.b32.xlu0 %v334_v36, %s573_s8  ;;  %336 = vst.msk [vmem:[%s218_s10] sm:$0xff] %vm232_vm0, %v334_v36 }
 0x134   : > { %v316_v38 = vsub.f32 1.5, %v315_v37 }
 0x136   : > { %v317_v39 = vmul.f32 %v508_v30, %v316_v38 }
 0x138   : > { %v321_v40 = vsel %vm320_vm7, %v508_v30, %v317_v39 }
 0x139   : > { %v323_v41 = vmul.f32 %v321_v40, %v259_v16 }
 0x13b   : > { %v330_v42 = vmul.f32 %v503_v28, %v323_v41 }
 0x13d   : > { %v335_v43 = vadd.f32 %v504_v32, %v330_v42 }
 0x13f   : > { %342 = vrot.lane.b32.xlu0 %v335_v43, %s573_s8  ;;  %337 = vst.msk [vmem:[%s218_s10 + $0x10] sm:$0xff] %vm232_vm0, %v335_v43 }
 0x1a5   : > { %v341_v44 = vpop.permute.xlu0 %340 }
 0x1a6   : > { %439 = vst.msk [vmem:[%s218_s10 + $0x8] sm:$0xff] %vm232_vm0, %v341_v44 }
 0x1b1   : > { %v343_v45 = vpop.permute.xlu0 %342 }
 0x1b2   : > { %440 = vst.msk [vmem:[%s218_s10 + $0x18] sm:$0xff] %vm232_vm0, %v343_v45 }
 0x1b3   : > { %536 = shalt.err (!%p533_p3)
}
 0x1b4   : > { %s574_s23 = smov 128   ;;  %s575_s8 = smov 8  }
 0x1b5   : > { %461 = dma.vmem_to_hbm [thread:$0]  (%p644_p5), %s364_s14, 512, %s366_s15, %s350_s16, %s574_s23, %s574_s23, %s575_s8  }
 0x1b6 PF: > { %p467_p4 = scmp.ge.s32.totalorder %s571_s21, 2  ;;  %s380_s10 = sand.u32 1, %s559_s18  }
 0x1b7   : > { %s381_s9 = scalar_lea.sflag [#allocation3], %s380_s10 }
 0x1b8   : > { %p464_p7 = pnand %p467_p4, %p648_p6 }
 0x1ba   : > { %p465_p8 = pneg %p464_p7 }
 0x1bc   : > { %554 = dma.done.wait (%p465_p8), %s381_s9, 512  }
 0x1bd   : > { %556 = vsyncadd (%p465_p8), %s381_s9, 4294966784  ;;  %p15_p9 = scmp.ge.s32.totalorder %s631_s24, 10   ;;  %s750_s18 = smov %s563_s19 }
 0x1be   : > { %s751_s19 = smov %s567_s20  ;;  %s752_s20 = smov %s642_s27 }
 0x1bf   : > { %s753_s21 = smov %s631_s24  ;;  %17 = sbr.rel (!%p15_p9) target bundleno = 3 (0x3), region = 76 }
 0x1c4   :  { %387 = vsyncpa [#allocation3], 1 }
 0x1c5   :  { %389 = vsyncpa [#allocation3 + $0x1], 1 }

</bundles_post_ra>
